<compile_context>
chip_gen: v7x
topology: tpu7x:2x2x1
jax: 0.10.0
libtpu: 0.0.40
codegen_flags: <defaults>
</compile_context>

<pallas_src>
import functools

import jax
import jax.numpy as jnp
from jax.experimental import pallas as pl
from jax.experimental.pallas import tpu as pltpu

NEG_SLOPE = 0.2  # LeakyReLU slope of the synthetic critic


def _wgangp_kernel(gt_ref, fake_ref, alpha_ref, vis_ref, w1_ref, w1t_ref,
                   b1_ref, w2_ref, part_ref, *, num_c, batch_block,
                   batch_total, batch_padded):
    step = pl.program_id(0)

    # output = alpha * gt_kps + (1 - alpha) * fake_kps.detach()
    alpha = alpha_ref[...]                                     # (BB, 1) f32
    gt = gt_ref[...].astype(jnp.float32)                       # bf16 DMA -> f32
    fake = fake_ref[...].astype(jnp.float32)
    x = alpha * gt + (1.0 - alpha) * fake                      # (BB, F) f32

    # visibility mask, expanded (BB, K) -> (BB, C*K) (C-major feature layout)
    vis = jnp.concatenate([vis_ref[...]] * num_c, axis=-1)     # (BB, F) f32

    # Critic forward pieces needed for the analytic input-gradient.  src_out
    # itself (and therefore b2) never enters the GP loss (grad_outputs = ones),
    # so it is not materialized.
    xm = x * vis                                               # (BB, F) f32
    h_pre = jnp.dot(xm.astype(jnp.bfloat16), w1_ref[...],
                    preferred_element_type=jnp.float32) + b1_ref[...]  # (BB,H)

    # d src_out / d output = (leaky'(h_pre) * w2) @ w1^T, masked by vis.
    dh = jnp.where(h_pre > 0, 1.0, NEG_SLOPE) * w2_ref[...]    # (BB, H) f32
    dxm = jnp.dot(dh.astype(jnp.bfloat16), w1t_ref[...],
                  preferred_element_type=jnp.float32)          # (BB, F) f32
    dx = dxm * vis

    # per-row gradient penalty (||grad||_2 - 1)^2
    sq = jnp.sum(dx * dx, axis=1, keepdims=True)               # (BB, 1)
    pen = (jnp.sqrt(sq) - 1.0) ** 2                            # (BB, 1)

    # Batch-padding mask: statically compiled out when B divides the block
    # size.  When padding exists, only the final block actually contains
    # padded rows; the iota/compare on a (BB,1) column is negligible next to
    # the (BB,F) matmuls, so it is kept branch-free for all blocks.
    if batch_padded != batch_total:
        rows = (jax.lax.broadcasted_iota(jnp.int32, (batch_block, 1), 0)
                + step * batch_block)
        pen = jnp.where(rows < batch_total, pen, 0.0)

    # Per-block partial sum written to a lane-aligned (1, 8, 128) output tile:
    # no state is carried across the grid axis, so it can be sharded across
    # TensorCores ("parallel"); the wrapper reads [:, 0, 0] and finishes the
    # mean.
    part_ref[...] = jnp.full(part_ref.shape, jnp.sum(pen), dtype=jnp.float32)


def init_critic_params(key, feat_dim, hidden_dim):
    """Deterministic synthetic critic parameters (C-major feature layout)."""
    k1, k2, k3, k4 = jax.random.split(key, 4)
    w1 = (jax.random.normal(k1, (feat_dim, hidden_dim), jnp.float32)
          / jnp.sqrt(jnp.float32(feat_dim)))
    b1 = 0.01 * jax.random.normal(k2, (1, hidden_dim), jnp.float32)
    w2row = (jax.random.normal(k3, (1, hidden_dim), jnp.float32)
             / jnp.sqrt(jnp.float32(hidden_dim)))
    b2 = 0.01 * jax.random.normal(k4, (1, 1), jnp.float32)
    return (w1, b1, w2row, b2)


def wgangp_loss(gt_kps, pred_kps, new_kps, vis_idx, alpha, params,
                numCam='single', batch_block=2048):
    """Pallas implementation of WGANGP.forward (gradient-penalty loss)."""
    B, K, C = gt_kps.shape
    F = K * C
    fake_kps = pred_kps if numCam == 'single' else new_kps

    # C-major flatten (feature f = c*K + k): lets the kernel expand the (B, K)
    # visibility mask with a simple lane concat.  Critic weights and the
    # reference use the identical layout.  gt/fake are DMA'd as bf16 (they
    # only affect the gradient through the sign of h_pre).
    gt_flat = (jnp.transpose(gt_kps, (0, 2, 1)).reshape(B, F)
               .astype(jnp.bfloat16))
    fake_flat = (jnp.transpose(fake_kps, (0, 2, 1)).reshape(B, F)
                 .astype(jnp.bfloat16))            # .detach() implicit in JAX
    vis = vis_idx.astype(jnp.float32)              # (B, K)
    alpha_flat = alpha.reshape(B, 1).astype(jnp.float32)

    w1, b1, w2row, _b2 = params                    # b2 never affects the GP
    H = w1.shape[1]
    w1_bf16 = w1.astype(jnp.bfloat16)              # MXU inputs; f32 accumulate
    w1t_bf16 = w1.T.astype(jnp.bfloat16)           # resident transposed copy

    # Block size: big enough to amortize per-step overhead and fill the MXU
    # M-dimension, capped by the (sublane-rounded) batch.  Multiple of 8.
    b_round8 = pl.cdiv(B, 8) * 8
    bb = min(max(int(batch_block), 8), b_round8)
    bb = pl.cdiv(bb, 8) * 8
    num_blocks = pl.cdiv(B, bb)
    b_pad = num_blocks * bb
    pad = b_pad - B
    if pad:
        gt_flat = jnp.pad(gt_flat, ((0, pad), (0, 0)))
        fake_flat = jnp.pad(fake_flat, ((0, pad), (0, 0)))
        vis = jnp.pad(vis, ((0, pad), (0, 0)))
        alpha_flat = jnp.pad(alpha_flat, ((0, pad), (0, 0)))

    kernel = functools.partial(_wgangp_kernel, num_c=C, batch_block=bb,
                               batch_total=B, batch_padded=b_pad)
    parts = pl.pallas_call(
        kernel,
        out_shape=jax.ShapeDtypeStruct((num_blocks, 8, 128), jnp.float32),
        grid=(num_blocks,),
        in_specs=[
            pl.BlockSpec((bb, F), lambda i: (i, 0)),   # gt      (streamed bf16)
            pl.BlockSpec((bb, F), lambda i: (i, 0)),   # fake    (streamed bf16)
            pl.BlockSpec((bb, 1), lambda i: (i, 0)),   # alpha   (streamed f32)
            pl.BlockSpec((bb, K), lambda i: (i, 0)),   # vis     (streamed f32)
            pl.BlockSpec((F, H), lambda i: (0, 0)),    # w1      (resident)
            pl.BlockSpec((H, F), lambda i: (0, 0)),    # w1^T    (resident)
            pl.BlockSpec((1, H), lambda i: (0, 0)),    # b1      (resident)
            pl.BlockSpec((1, H), lambda i: (0, 0)),    # w2 row  (resident)
        ],
        out_specs=pl.BlockSpec((1, 8, 128), lambda i: (i, 0, 0)),
        compiler_params=pltpu.CompilerParams(
            # no carried state across the batch axis -> shardable across TCs.
            dimension_semantics=("parallel",)),
    )(gt_flat, fake_flat, alpha_flat, vis, w1_bf16, w1t_bf16, b1, w2row)

    return jnp.sum(parts[:, 0, 0]) / B


# ----- pure-JAX reference (autodiff, mirrors torch.autograd.grad), f32 -----
def _critic_ref(x_flat, vis_flat, params):
    w1, b1, w2row, b2 = params
    xm = x_flat * vis_flat
    h_pre = xm @ w1 + b1
    h = jnp.where(h_pre > 0, h_pre, NEG_SLOPE * h_pre)
    return jnp.sum(h * w2row, axis=1, keepdims=True) + b2


def _ref_loss(gt_kps, fake_kps, alpha, vis_idx, params):
    B, K, C = gt_kps.shape
    F = K * C
    vis_flat = jnp.tile(vis_idx.astype(jnp.float32), (1, C))   # C-major layout
    x = jnp.transpose(alpha * gt_kps + (1.0 - alpha) * fake_kps,
                      (0, 2, 1)).reshape(B, F)
    g = jax.grad(lambda xx: jnp.sum(_critic_ref(xx, vis_flat, params)))(x)
    l2 = jnp.sqrt(jnp.sum(g * g, axis=1))
    return jnp.mean((l2 - 1.0) ** 2)


if __name__ == "__main__":
    key = jax.random.PRNGKey(0)
    k_gt, k_pred, k_new, k_vis, k_alpha, k_params = jax.random.split(key, 6)

    # batch (exercises padding), keypoints, coords, hidden
    B, K, C, H = 10, 16, 2, 32

    gt_kps = jax.random.normal(k_gt, (B, K, C), jnp.float32)
    pred_kps = jax.random.normal(k_pred, (B, K, C), jnp.float32)
    new_kps = jax.random.normal(k_new, (B, K, C), jnp.float32)
    vis_idx = (jax.random.uniform(k_vis, (B, K)) > 0.3).astype(jnp.float32)
    # alpha = torch.rand(batch_size, 1, 1)
    alpha = jax.random.uniform(k_alpha, (B, 1, 1), jnp.float32)

    params = init_critic_params(k_params, K * C, H)

    ref = _ref_loss(gt_kps, pred_kps, alpha, vis_idx, params)

    # Default (single large block): the production path.
    loss = wgangp_loss(gt_kps, pred_kps, new_kps, vis_idx, alpha, params,
                       numCam='single')
    loss = jax.block_until_ready(loss)
    # bf16 MXU inputs vs. f32 autodiff reference: expect ~1e-3-level drift.
    assert jnp.allclose(loss, ref, rtol=5e-2, atol=2e-2), (loss, ref)

    # Multi-block path (exercises per-block partial outputs + padding mask).
    loss_mb = wgangp_loss(gt_kps, pred_kps, new_kps, vis_idx, alpha, params,
                          numCam='single', batch_block=8)
    loss_mb = jax.block_until_ready(loss_mb)
    assert jnp.allclose(loss_mb, ref, rtol=5e-2, atol=2e-2), (loss_mb, ref)

    print("KERNEL_OK")
</pallas_src>

<mosaic_0001>
module attributes {stable_mosaic.version = 11 : i64} {
  func.func @_wgangp_kernel(%arg0: i32, %arg1: memref<16x32xbf16, #tpu.memory_space<vmem>>, %arg2: memref<16x32xbf16, #tpu.memory_space<vmem>>, %arg3: memref<16x1xf32, #tpu.memory_space<vmem>>, %arg4: memref<16x16xf32, #tpu.memory_space<vmem>>, %arg5: memref<32x32xbf16, #tpu.memory_space<vmem>>, %arg6: memref<32x32xbf16, #tpu.memory_space<vmem>>, %arg7: memref<1x32xf32, #tpu.memory_space<vmem>>, %arg8: memref<1x32xf32, #tpu.memory_space<vmem>>, %arg9: memref<1x8x128xf32, #tpu.memory_space<vmem>>) attributes {dimension_semantics = [#tpu.dimension_semantics<parallel>], iteration_bounds = array<i64: 1>, scalar_prefetch = 0 : i64, scratch_operands = 0 : i64, tpu.core_type = #tpu.core_type<tc>, window_params = [{transform_indices = @transform_0, window_bounds = array<i64: 16, 32>}, {transform_indices = @transform_1, window_bounds = array<i64: 16, 32>}, {transform_indices = @transform_2, window_bounds = array<i64: 16, 1>}, {transform_indices = @transform_3, window_bounds = array<i64: 16, 16>}, {pipeline_mode = #tpu.pipeline_mode<synchronous>, transform_indices = @transform_4, window_bounds = array<i64: 32, 32>}, {pipeline_mode = #tpu.pipeline_mode<synchronous>, transform_indices = @transform_5, window_bounds = array<i64: 32, 32>}, {pipeline_mode = #tpu.pipeline_mode<synchronous>, transform_indices = @transform_6, window_bounds = array<i64: 1, 32>}, {pipeline_mode = #tpu.pipeline_mode<synchronous>, transform_indices = @transform_7, window_bounds = array<i64: 1, 32>}, {transform_indices = @transform_8, window_bounds = array<i64: 1, 8, 128>}]} {
    %c0 = arith.constant 0 : index
    %c0_0 = arith.constant 0 : index
    %0 = vector.load %arg3[%c0, %c0_0] : memref<16x1xf32, #tpu.memory_space<vmem>>, vector<16x1xf32>
    %c0_1 = arith.constant 0 : index
    %c0_2 = arith.constant 0 : index
    %1 = vector.load %arg1[%c0_1, %c0_2] : memref<16x32xbf16, #tpu.memory_space<vmem>>, vector<16x32xbf16>
    %2 = arith.extf %1 : vector<16x32xbf16> to vector<16x32xf32>
    %c0_3 = arith.constant 0 : index
    %c0_4 = arith.constant 0 : index
    %3 = vector.load %arg2[%c0_3, %c0_4] : memref<16x32xbf16, #tpu.memory_space<vmem>>, vector<16x32xbf16>
    %4 = arith.extf %3 : vector<16x32xbf16> to vector<16x32xf32>
    %5 = vector.broadcast %0 : vector<16x1xf32> to vector<16x32xf32>
    %6 = arith.mulf %5, %2 : vector<16x32xf32>
    %cst = arith.constant 1.000000e+00 : f32
    %7 = vector.broadcast %cst : f32 to vector<16x1xf32>
    %8 = arith.subf %7, %0 : vector<16x1xf32>
    %9 = vector.broadcast %8 : vector<16x1xf32> to vector<16x32xf32>
    %10 = arith.mulf %9, %4 : vector<16x32xf32>
    %11 = arith.addf %6, %10 : vector<16x32xf32>
    %c0_5 = arith.constant 0 : index
    %c0_6 = arith.constant 0 : index
    %12 = vector.load %arg4[%c0_5, %c0_6] : memref<16x16xf32, #tpu.memory_space<vmem>>, vector<16x16xf32>
    %13 = tpu.concatenate %12, %12 in 1 : vector<16x16xf32>, vector<16x16xf32> -> vector<16x32xf32>
    %14 = arith.mulf %11, %13 : vector<16x32xf32>
    %15 = arith.truncf %14 : vector<16x32xf32> to vector<16x32xbf16>
    %c0_7 = arith.constant 0 : index
    %c0_8 = arith.constant 0 : index
    %16 = vector.load %arg5[%c0_7, %c0_8] : memref<32x32xbf16, #tpu.memory_space<vmem>>, vector<32x32xbf16>
    %cst_9 = arith.constant dense<0.000000e+00> : vector<16x32xf32>
    %17 = tpu.matmul %15, %16, %cst_9 {dimension_numbers = #tpu.dot_dimension_numbers<[1], [0], [0], [1], [0, 0, 1, 1], [], []>} : vector<16x32xbf16>, vector<32x32xbf16>, vector<16x32xf32> -> vector<16x32xf32>
    %c0_10 = arith.constant 0 : index
    %c0_11 = arith.constant 0 : index
    %18 = vector.load %arg7[%c0_10, %c0_11] : memref<1x32xf32, #tpu.memory_space<vmem>>, vector<1x32xf32>
    %19 = vector.broadcast %18 : vector<1x32xf32> to vector<16x32xf32>
    %20 = arith.addf %17, %19 : vector<16x32xf32>
    %cst_12 = arith.constant 0.000000e+00 : f32
    %21 = vector.broadcast %cst_12 : f32 to vector<16x32xf32>
    %22 = arith.cmpf ogt, %20, %21 : vector<16x32xf32>
    %cst_13 = arith.constant 1.000000e+00 : f32
    %cst_14 = arith.constant 2.000000e-01 : f32
    %23 = vector.broadcast %cst_13 : f32 to vector<16x32xf32>
    %24 = vector.broadcast %cst_14 : f32 to vector<16x32xf32>
    %25 = arith.select %22, %23, %24 : vector<16x32xi1>, vector<16x32xf32>
    %c0_15 = arith.constant 0 : index
    %c0_16 = arith.constant 0 : index
    %26 = vector.load %arg8[%c0_15, %c0_16] : memref<1x32xf32, #tpu.memory_space<vmem>>, vector<1x32xf32>
    %27 = vector.broadcast %26 : vector<1x32xf32> to vector<16x32xf32>
    %28 = arith.mulf %25, %27 : vector<16x32xf32>
    %29 = arith.truncf %28 : vector<16x32xf32> to vector<16x32xbf16>
    %c0_17 = arith.constant 0 : index
    %c0_18 = arith.constant 0 : index
    %30 = vector.load %arg6[%c0_17, %c0_18] : memref<32x32xbf16, #tpu.memory_space<vmem>>, vector<32x32xbf16>
    %cst_19 = arith.constant dense<0.000000e+00> : vector<16x32xf32>
    %31 = tpu.matmul %29, %30, %cst_19 {dimension_numbers = #tpu.dot_dimension_numbers<[1], [0], [0], [1], [0, 0, 1, 1], [], []>} : vector<16x32xbf16>, vector<32x32xbf16>, vector<16x32xf32> -> vector<16x32xf32>
    %32 = arith.mulf %31, %13 : vector<16x32xf32>
    %33 = arith.mulf %32, %32 : vector<16x32xf32>
    %cst_20 = arith.constant dense<0.000000e+00> : vector<16xf32>
    %34 = vector.multi_reduction <add>, %33, %cst_20 [1] : vector<16x32xf32> to vector<16xf32>
    %35 = vector.shape_cast %34 : vector<16xf32> to vector<16x1xf32>
    %36 = math.sqrt %35 : vector<16x1xf32>
    %cst_21 = arith.constant 1.000000e+00 : f32
    %37 = vector.broadcast %cst_21 : f32 to vector<16x1xf32>
    %38 = arith.subf %36, %37 : vector<16x1xf32>
    %39 = arith.mulf %38, %38 : vector<16x1xf32>
    %40 = tpu.iota {dimensions = array<i32: 0>} : vector<16x1xi32>
    %c16_i32 = arith.constant 16 : i32
    %41 = arith.muli %arg0, %c16_i32 : i32
    %42 = vector.broadcast %41 : i32 to vector<16x1xi32>
    %43 = arith.addi %40, %42 : vector<16x1xi32>
    %c10_i32 = arith.constant 10 : i32
    %44 = vector.broadcast %c10_i32 : i32 to vector<16x1xi32>
    %45 = arith.cmpi slt, %43, %44 : vector<16x1xi32>
    %cst_22 = arith.constant 0.000000e+00 : f32
    %46 = vector.broadcast %cst_22 : f32 to vector<16x1xf32>
    %47 = arith.select %45, %39, %46 : vector<16x1xi1>, vector<16x1xf32>
    %48 = vector.shape_cast %47 : vector<16x1xf32> to vector<1x16x1xf32>
    %cst_23 = arith.constant dense<0.000000e+00> : vector<1xf32>
    %49 = vector.multi_reduction <add>, %48, %cst_23 [1, 2] : vector<1x16x1xf32> to vector<1xf32>
    %50 = vector.shape_cast %49 : vector<1xf32> to vector<1x1x1xf32>
    %51 = vector.extract %50[0, 0, 0] : f32 from vector<1x1x1xf32>
    %52 = vector.broadcast %51 : f32 to vector<1x8x128xf32>
    %c0_24 = arith.constant 0 : index
    %c0_25 = arith.constant 0 : index
    %c0_26 = arith.constant 0 : index
    %53 = vector.load %arg9[%c0_24, %c0_25, %c0_26] : memref<1x8x128xf32, #tpu.memory_space<vmem>>, vector<1x8x128xf32>
    tpu.vector_store %arg9[%c0_24, %c0_25, %c0_26], %52 {strides = array<i32>} : memref<1x8x128xf32, #tpu.memory_space<vmem>>, vector<1x8x128xf32>,
    return
  }
  func.func @transform_0(%arg0: i32) -> (i32, i32) {
    %c0_i32 = arith.constant 0 : i32
    %c0_i32_0 = arith.constant 0 : i32
    return %arg0, %c0_i32 : i32, i32
  }
  func.func @transform_1(%arg0: i32) -> (i32, i32) {
    %c0_i32 = arith.constant 0 : i32
    %c0_i32_0 = arith.constant 0 : i32
    return %arg0, %c0_i32 : i32, i32
  }
  func.func @transform_2(%arg0: i32) -> (i32, i32) {
    %c0_i32 = arith.constant 0 : i32
    %c0_i32_0 = arith.constant 0 : i32
    return %arg0, %c0_i32 : i32, i32
  }
  func.func @transform_3(%arg0: i32) -> (i32, i32) {
    %c0_i32 = arith.constant 0 : i32
    %c0_i32_0 = arith.constant 0 : i32
    return %arg0, %c0_i32 : i32, i32
  }
  func.func @transform_4(%arg0: i32) -> (i32, i32) {
    %c0_i32 = arith.constant 0 : i32
    %c0_i32_0 = arith.constant 0 : i32
    %c0_i32_1 = arith.constant 0 : i32
    return %c0_i32, %c0_i32_0 : i32, i32
  }
  func.func @transform_5(%arg0: i32) -> (i32, i32) {
    %c0_i32 = arith.constant 0 : i32
    %c0_i32_0 = arith.constant 0 : i32
    %c0_i32_1 = arith.constant 0 : i32
    return %c0_i32, %c0_i32_0 : i32, i32
  }
  func.func @transform_6(%arg0: i32) -> (i32, i32) {
    %c0_i32 = arith.constant 0 : i32
    %c0_i32_0 = arith.constant 0 : i32
    %c0_i32_1 = arith.constant 0 : i32
    return %c0_i32, %c0_i32_0 : i32, i32
  }
  func.func @transform_7(%arg0: i32) -> (i32, i32) {
    %c0_i32 = arith.constant 0 : i32
    %c0_i32_0 = arith.constant 0 : i32
    %c0_i32_1 = arith.constant 0 : i32
    return %c0_i32, %c0_i32_0 : i32, i32
  }
  func.func @transform_8(%arg0: i32) -> (i32, i32, i32) {
    %c0_i32 = arith.constant 0 : i32
    %c0_i32_0 = arith.constant 0 : i32
    %c0_i32_1 = arith.constant 0 : i32
    return %arg0, %c0_i32, %c0_i32_0 : i32, i32, i32
  }
}

</mosaic_0001>

<bundles_post_ra>
// kernel: tpu_custom_call.1
= control target key start
LH: loop header
LB: loop body
LE: loop exit
PB: predicated region body
PF: predicated region fallthrough
CT: control target
= control target key end

     0   :  { %13 = vsyncpa [#allocation3], 0  ;;  %s643_s0 = inlined_call_operand.hbm [shape: bf16[16,32], index: 0, kind: input, shape index: {}]   ;;  %s644_s1 = inlined_call_operand.hbm [shape: bf16[16,32], index: 1, kind: input, shape index: {}]   ;;  %s645_s2 = inlined_call_operand.vmem [shape: f32[16,1], index: 2, kind: input, shape index: {}]   ;;  %s646_s3 = inlined_call_operand.vmem [shape: f32[16,16], index: 3, kind: input, shape index: {}]   ;;  %s647_s4 = inlined_call_operand.vmem [shape: bf16[32,32], index: 4, kind: input, shape index: {}]   ;;  %s648_s5 = inlined_call_operand.hbm [shape: bf16[32,32], index: 5, kind: input, shape index: {}]   ;;  %s649_s6 = inlined_call_operand.vmem [shape: f32[1,32], index: 6, kind: input, shape index: {}]   ;;  %s650_s7 = inlined_call_operand.vmem [shape: f32[1,32], index: 7, kind: input, shape index: {}]   ;;  %s651_s8 = inlined_call_operand.hbm [shape: f32[1,8,128], index: 8, kind: output, shape index: {}]  }
   0x1   :  { %14 = vsyncpa [#allocation6], 0 }
   0x2   :  { %15 = vsyncpa [#allocation4], 0  ;;  %s495_s27 = smov [#allocation5]   ;;  %s496_s29 = smov [#allocation2]  }
   0x3   :  { %s33_s28 = sshll.u32 %s495_s27, 4  ;;  %s21_s30 = sshll.u32 %s496_s29, 4  ;;  %s34_s28 = int_to_ptr.vmem [resolvable:$true] %s33_s28  ;;  %s551_s30 = int_to_ptr.vmem [resolvable:$true] %s21_s30 }
   0x4   :  { %s401_s11 = scalar_lea.hbm %s644_s1, 128 }
   0x5   :  { %p402_p0 = scmp.ne.s32.totalorder %s644_s1, %s401_s11  ;;  %p405_p1 = scmp.lt.u32.totalorder %s401_s11, %s644_s1 }
   0x7   :  { %p407_p2 = pnand %p405_p1, %p402_p0 }
   0x9   :  { %410 = shalt.err (!%p407_p2)
}
   0xa   :  { %s411_s16 = scalar_lea.vmem %s34_s28, 128  ;;  %p416_p4 = scmp.lt.s32.totalorder %s34_s28, %s34_s28 }
   0xb   :  { %p412_p3 = scmp.ne.s32.totalorder %s34_s28, %s411_s16  ;;  %p417_p5 = scmp.lt.s32.totalorder %s411_s16, %s411_s16 }
   0xd   :  { %p418_p6 = por %p417_p5, %p416_p4 }
   0xf   :  { %p419_p7 = pnand %p418_p6, %p412_p3 }
  0x11   :  { %422 = shalt.err (!%p419_p7)
}
  0x12   :  { %s497_s17 = smov 64   ;;  %s498_s18 = smov 4  }
  0x13   :  { %39 = dma.hbm_to_vmem [thread:$0]  %s644_s1, 128, %s34_s28, [#allocation6], %s497_s17, %s497_s17, %s498_s18  }
  0x14   :  { %s423_s23 = scalar_lea.hbm %s643_s0, 128 }
  0x15   :  { %p424_p8 = scmp.ne.s32.totalorder %s643_s0, %s423_s23  ;;  %p427_p9 = scmp.lt.u32.totalorder %s423_s23, %s643_s0 }
  0x17   :  { %p429_p10 = pnand %p427_p9, %p424_p8 }
  0x19   :  { %432 = shalt.err (!%p429_p10)
}
  0x1a   :  { %s433_s29 = scalar_lea.vmem %s551_s30, 128  ;;  %p438_p12 = scmp.lt.s32.totalorder %s551_s30, %s551_s30 }
  0x1b   :  { %p434_p11 = scmp.ne.s32.totalorder %s551_s30, %s433_s29  ;;  %p439_p13 = scmp.lt.s32.totalorder %s433_s29, %s433_s29 }
  0x1d   :  { %p440_p0 = por %p439_p13, %p438_p12 }
  0x1f   :  { %p441_p1 = pnand %p440_p0, %p434_p11 }
  0x21   :  { %444 = shalt.err (!%p441_p1)
}
  0x22   :  { %27 = dma.hbm_to_vmem [thread:$0]  %s643_s0, 128, %s551_s30, [#allocation3], %s497_s17, %s497_s17, %s498_s18  }
  0x23   :  { %s499_s9 = smov [#allocation7]   ;;  %s445_s13 = scalar_lea.hbm %s648_s5, 256 }
  0x24   :  { %s51_s10 = sshll.u32 %s499_s9, 4  ;;  %p446_p2 = scmp.ne.s32.totalorder %s648_s5, %s445_s13  ;;  %s52_s10 = int_to_ptr.vmem [resolvable:$true] %s51_s10 }
  0x25   :  { %p449_p3 = scmp.lt.u32.totalorder %s445_s13, %s648_s5 }
  0x27   :  { %p451_p4 = pnand %p449_p3, %p446_p2 }
  0x29   :  { %454 = shalt.err (!%p451_p4)
}
  0x2a   :  { %s455_s20 = scalar_lea.vmem %s52_s10, 256  ;;  %p460_p6 = scmp.lt.s32.totalorder %s52_s10, %s52_s10 }
  0x2b   :  { %p456_p5 = scmp.ne.s32.totalorder %s52_s10, %s455_s20  ;;  %p461_p7 = scmp.lt.s32.totalorder %s455_s20, %s455_s20 }
  0x2d   :  { %p462_p8 = por %p461_p7, %p460_p6 }
  0x2f   :  { %p463_p9 = pnand %p462_p8, %p456_p5 }
  0x31   :  { %466 = shalt.err (!%p463_p9)
}
  0x32   :  { %57 = dma.hbm_to_vmem [thread:$0]  %s648_s5, 256, %s52_s10, [#allocation6], %s497_s17, %s497_s17, %s498_s18  }
  0x33   :  { %489 = dma.done.wait [#allocation3], 128  }
  0x34   :  { %490 = vsyncadd [#allocation3], 4294967168 }
  0x35   :  { %491 = dma.done.wait [#allocation6], 384  }
  0x36   :  { %492 = vsyncadd [#allocation6], 4294966912  ;;  %v500_v0 = vmov 0   ;;  %v72_v1 = vld [vmem:[%s645_s2] sm:$0xff]  ;;  %v73_v2 = vld [vmem:[%s645_s2 + $0x8] sm:$0xff]  ;;  %v501_v8 = vmov 0.0   ;;  %v296_v61 = vlaneseq }
  0x37   :  { %391 = vset.pattern.permute.xlu0 %v500_v0  ;;  %392 = vset.pattern.permute.xlu1 %v500_v0  ;;  %v94_v3 = vsub.f32 1.0, %v72_v1  ;;  %v95_v4 = vsub.f32 1.0, %v73_v2  ;;  %v110_v5 = vld [vmem:[%s646_s3] sm:$0xff]  ;;  %v111_v7 = vld [vmem:[%s646_s3 + $0x8] sm:$0xff]  ;;  %s502_s2 = smov 16   ;;  %vm503_vm0 = vmmov 0  }
  0x38   :  { %84 = vperm.xlu0 %391, %v72_v1   ;;  %v393_v6 = vld [vmem:[%s647_s4] sm:$0xff]   ;;  %362 = vmatprep.subr.bf16.mxu0 %v501_v8  ;;  %v394_v9 = vld [vmem:[%s647_s4 + $0x8] sm:$0xff]   ;;  %vm120_vm1 = vcmask 130048   ;;  %vm149_vm2 = vcmask 261120   ;;  %v395_v33 = vld [vmem:[#allocation7] sm:$0xff]   ;;  %v297_v63 = vshrl.u32 %v296_v61, 7 }
  0x39   :  { %98 = vperm.xlu1 %392, %v94_v3   ;;  %370 = vmatprep.subr.bf16.mxu1 %v501_v8  ;;  %v349_v10 = vld [vmem:[#allocation2] sm:$0xff]   ;;  %v353_v11 = vld [vmem:[#allocation5] sm:$0xff]   ;;  %v396_v34 = vld [vmem:[#allocation7 + $0x8] sm:$0xff]   ;;  %v504_v42 = vmov 0.2   ;;  %vm307_vm10 = vcmask 7168  }
  0x3a   :  { %363 = vmatpush3.bf16.msra.mxu0 %v393_v6  ;;  %366 = vmatprep.mubr.msk.bf16.mxu0 %vm503_vm0, %v501_v8  ;;  %v350_v13 = vunpack.c.l.bf16 %v349_v10  ;;  %v354_v14 = vunpack.c.l.bf16 %v353_v11  ;;  %v351_v16 = vunpack.c.h.bf16 %v349_v10  ;;  %v355_v17 = vunpack.c.h.bf16 %v353_v11  ;;  %v338_v35 = vld [vmem:[%s649_s6] ss:$0 sm:$0xff]  ;;  %s505_s6 = smov [#allocation8]  }
  0x3b   :  { %364 = vmatprep.subr.bf16.mxu0 %v501_v8  ;;  %374 = vmatprep.mubr.msk.bf16.mxu1 %vm503_vm0, %v501_v8  ;;  %v342_v44 = vld [vmem:[%s650_s7] ss:$0 sm:$0xff]  ;;  %s328_s7 = sshll.u32 %s505_s6, 4  ;;  %s329_s7 = int_to_ptr.vmem [resolvable:$true] %s328_s7 }
  0x3c   :  { %89 = vperm.xlu0 %391, %v73_v2   ;;  %371 = vmatpush3.bf16.msra.mxu1 %v395_v33  ;;  %s467_s11 = scalar_lea.vmem %s329_s7, 128  ;;  %p472_p11 = scmp.lt.s32.totalorder %s329_s7, %s329_s7 }
  0x3d   :  { %103 = vperm.xlu1 %392, %v95_v4   ;;  %372 = vmatprep.subr.bf16.mxu1 %v501_v8  ;;  %p468_p10 = scmp.ne.s32.totalorder %s329_s7, %s467_s11  ;;  %p473_p12 = scmp.lt.s32.totalorder %s467_s11, %s467_s11 }
  0x3e   :  { %365 = vmatpush3.bf16.msra.mxu0 %v394_v9 }
  0x3f   :  { %p474_p13 = por %p473_p12, %p472_p11 }
  0x40   :  { %114 = vrot.lane.b32.xlu0 %v110_v5, %s502_s2  ;;  %373 = vmatpush3.bf16.msra.mxu1 %v396_v34 }
  0x41   :  { %116 = vrot.lane.b32.xlu1 %v111_v7, %s502_s2  ;;  %p475_p0 = pnand %p474_p13, %p468_p10 }
  0xb7   :  { %v85_v12 = vpop.permute.xlu0 %84 }
  0xb8   :  { %v99_v15 = vpop.permute.xlu1 %98  ;;  %v92_v19 = vmul.f32 %v350_v13, %v85_v12 }
  0xb9   :  { %v106_v20 = vmul.f32 %v354_v14, %v99_v15 }
  0xbb   :  { %v90_v18 = vpop.permute.xlu0 %89  ;;  %v108_v27 = vadd.f32 %v106_v20, %v92_v19 }
  0xbc   :  { %v104_v21 = vpop.permute.xlu1 %103  ;;  %v93_v22 = vmul.f32 %v351_v16, %v90_v18 }
  0xbd   :  { %v107_v23 = vmul.f32 %v355_v17, %v104_v21 }
  0xbf   :  { %v115_v24 = vpop.permute.xlu0 %114  ;;  %v109_v25 = vadd.f32 %v107_v23, %v93_v22 }
  0xc0   :  { %v121_v26 = vsel %vm120_vm1, %v110_v5, %v115_v24  ;;  %v117_v28 = vpop.permute.xlu1 %116 }
  0xc1   :  { %v122_v29 = vsel %vm120_vm1, %v111_v7, %v117_v28  ;;  %v123_v30 = vmul.f32 %v121_v26, %v108_v27  ;;  %v298_v7 = vadd.s32 8, %v297_v63 }
  0xc2   :  { %v124_v31 = vmul.f32 %v122_v29, %v109_v25 }
  0xc3   :  { %vm304_vm9 = vcmp.lt.s32.totalorder %v298_v7, 10 }
  0xc4   :  { %v125_v32 = vpack.c.bf16 %v124_v31, %v123_v30 }
  0xc6   :  { %367 = vmatmul.mubr.msk.bf16.vlgmr.msra.gmra.mrb[0].mxu0 %vm149_vm2, %v125_v32 }
 0x199   :  { %v187_v36 = vpop.f32.mrb[0].mxu0 }
 0x19a   :  { %v188_v37 = vadd.f32 %v338_v35, %v187_v36  ;;  %v368_v38 = vpop.f32.mrb[1].mxu0 }
 0x19b   :  { %v190_v39 = vpop.f32.mrb[2].mxu0 }
 0x19c   :  { %vm194_vm3 = vcmp.gt.f32.partialorder %v188_v37, 0.0  ;;  %v191_v40 = vadd.f32 %v338_v35, %v190_v39  ;;  %v369_v41 = vpop.f32.mrb[3].mxu0 }
 0x19d   :  { %v196_v43 = vsel %vm194_vm3, 1.0, %v504_v42 }
 0x19e   :  { %vm195_vm4 = vcmp.gt.f32.partialorder %v191_v40, 0.0  ;;  %v205_v46 = vmul.f32 %v342_v44, %v196_v43 }
 0x19f   :  { %v197_v45 = vsel %vm195_vm4, 1.0, %v504_v42 }
 0x1a0   :  { %v206_v47 = vmul.f32 %v342_v44, %v197_v45 }
 0x1a2   :  { %v207_v48 = vpack.c.bf16 %v206_v47, %v205_v46 }
 0x1a4   :  { %375 = vmatmul.mubr.msk.bf16.vlgmr.msra.gmra.mrb[0].mxu1 %vm149_vm2, %v207_v48 }
 0x277   :  { %v261_v49 = vpop.f32.mrb[0].mxu1 }
 0x278   :  { %v268_v50 = vmul.f32 %v261_v49, %v121_v26  ;;  %v376_v51 = vpop.f32.mrb[1].mxu1 }
 0x279   :  { %v264_v52 = vpop.f32.mrb[2].mxu1 }
 0x27a   :  { %v270_v53 = vmul.f32 %v268_v50, %v268_v50  ;;  %v269_v54 = vmul.f32 %v264_v52, %v122_v29  ;;  %v377_v55 = vpop.f32.mrb[3].mxu1 }
 0x27c   :  { %v271_v56 = vmul.f32 %v269_v54, %v269_v54  ;;  %v272_v57 = vsel %vm149_vm2, %v270_v53, 0.0 }
 0x27d   :  { %273 = vadd.xlane.f32.xlu1 %v272_v57 }
 0x27e   :  { %v275_v58 = vsel %vm149_vm2, %v271_v56, 0.0 }
 0x27f   :  { %276 = vadd.xlane.f32.xlu0 %v275_v58 }
 0x30a   :  { %v274_v59 = vpop.xlane.xlu1 %273 }
 0x30b   :  { %397 = vrsqrt.f32 %v274_v59  ;;  %vm280_vm5 = vcmp.eq.f32.partialorder %v274_v59, inf  ;;  %v283_v2 = vand.u32 2147483648, %v274_v59  ;;  %vm282_vm6 = vcmp.eq.f32.partialorder %v274_v59, 0.0 }
 0x30c   :  { %v277_v60 = vpop.xlane.xlu0 %276 }
 0x30d   :  { %399 = vrsqrt.f32 %v277_v60  ;;  %vm287_vm7 = vcmp.eq.f32.partialorder %v277_v60, inf  ;;  %v290_v6 = vand.u32 2147483648, %v277_v60  ;;  %vm289_vm8 = vcmp.eq.f32.partialorder %v277_v60, 0.0 }
 0x315   :  { %v398_v62 = vpop.eup %397 }
 0x316   :  { %v279_v0 = vmul.f32 %v398_v62, %v274_v59 }
 0x317   :  { %v400_v1 = vpop.eup %399 }
 0x318   :  { %v286_v3 = vmul.f32 %v400_v1, %v277_v60  ;;  %v281_v4 = vsel %vm280_vm5, %v274_v59, %v279_v0 }
 0x319   :  { %v284_v5 = vsel %vm282_vm6, %v283_v2, %v281_v4 }
 0x31a   :  { %v288_v8 = vsel %vm287_vm7, %v277_v60, %v286_v3  ;;  %v346_v9 = vadd.f32 -1.0, %v284_v5 }
 0x31b   :  { %v291_v10 = vsel %vm289_vm8, %v290_v6, %v288_v8 }
 0x31c   :  { %v347_v11 = vadd.f32 -1.0, %v291_v10  ;;  %v294_v12 = vmul.f32 %v346_v9, %v346_v9 }
 0x31e   :  { %v295_v13 = vmul.f32 %v347_v11, %v347_v11  ;;  %v308_v15 = vsel %vm307_vm10, %v294_v12, 0.0 }
 0x320   :  { %v306_v14 = vsel %vm304_vm9, %v295_v13, 0.0 }
 0x321   :  { %v309_v16 = vsel %vm307_vm10, %v306_v14, 0.0 }
 0x322   :  { %v310_v17 = vadd.f32 %v309_v16, %v308_v15 }
 0x324   :  { %311 = vadd.xlane.f32.xlu0 %v310_v17 }
 0x3b1   :  { %v312_v18 = vpop.xlane.xlu0 %311 }
 0x3b2   :  { %v313_v19 = vrot.slane %v312_v18, 4 }
 0x3b4   :  { %v314_v20 = vadd.f32 %v313_v19, %v312_v18 }
 0x3b6   :  { %v315_v21 = vrot.slane %v314_v20, 2 }
 0x3b8   :  { %v316_v22 = vadd.f32 %v315_v21, %v314_v20 }
 0x3ba   :  { %v317_v23 = vrot.slane %v316_v22, 1 }
 0x3bc   :  { %v318_v24 = vadd.f32 %v317_v23, %v316_v22 }
 0x3be   :  { %378 = vpush %v318_v24 }
 0x3ef   :  { %s379_s10 = spop %378 }
 0x3f0   :  { %v320_v25 = vstv %s379_s10 }
 0x3f1   :  { %321 = vst [vmem:[#allocation8] sm:$0xff] %v320_v25 }
 0x3f2   :  { %478 = shalt.err (!%p475_p0)
}
 0x3f3   :  { %s479_s14 = scalar_lea.hbm %s651_s8, 128 }
 0x3f4   :  { %p480_p1 = scmp.ne.s32.totalorder %s651_s8, %s479_s14  ;;  %p483_p2 = scmp.lt.u32.totalorder %s479_s14, %s651_s8 }
 0x3f6   :  { %p485_p3 = pnand %p483_p2, %p480_p1 }
 0x3f8   :  { %488 = shalt.err (!%p485_p3)
}
 0x3f9   :  { %331 = dma.vmem_to_hbm [thread:$0]  %s329_s7, 128, %s651_s8, [#allocation4]  }
 0x3fa   :  { %493 = dma.done.wait [#allocation4], 128  }
 0x3fb   :  { %494 = vsyncadd [#allocation4], 4294967168 }
 0x3fc   :  { %335 = vsyncpa [#allocation3], 1 }
 0x3fd   :  { %336 = vsyncpa [#allocation6], 1 }
 0x3fe   :  { %337 = vsyncpa [#allocation4], 1 }

</bundles_post_ra>
